<compile_context>
chip_gen: v6e
topology: v6e:2x2x1
jax: 0.10.0
libtpu: 0.0.40
codegen_flags: <defaults>
</compile_context>

<pallas_src>
import math

import jax
import jax.numpy as jnp
from jax import lax
from jax.experimental import pallas as pl
from jax.experimental.pallas import tpu as pltpu


def _sero_kernel(x_ref, wq_ref, bq_ref, wk_ref, bk_ref,
                 out_ref, attn_ref, k_scratch, asum_ref):
    """One grid step = one (batch block, query tile).

    x_ref    : (Bt, N, C)   resident across all query tiles of this batch block
    wq/wk    : (C, Cq)      weights (stored transposed vs. torch nn.Linear)
    bq/bk    : (1, Cq)
    out_ref  : (Bt, 1, C)   pooled output (same block across the query axis)
    attn_ref : (Bt, Tq, N)  attention rows of the current query tile
    k_scratch: VMEM (Bt, N, Cq)  K, computed once per batch block
    asum_ref : VMEM (Bt, 1, N)   running column-sums of A over query tiles
    """
    qi = pl.program_id(1)

    Bt, N, C = x_ref.shape
    Cq = wq_ref.shape[1]
    Tq = attn_ref.shape[1]
    nq = N // Tq
    inv_sqrt_c = 1.0 / math.sqrt(C)

    # -- first query tile of this batch block: init accumulator, compute K once.
    #    Chunked over N so no full (Bt*N, Cq) f32 temporary is ever live; each
    #    chunk is written straight into the VMEM scratch.
    @pl.when(qi == 0)
    def _init():
        asum_ref[...] = jnp.zeros_like(asum_ref)

        def _k_chunk(i, carry):
            r0 = pl.multiple_of(i * Tq, Tq)
            xc = x_ref[:, pl.ds(r0, Tq), :]                       # (Bt, Tq, C)
            kc = jnp.dot(xc.reshape(Bt * Tq, C), wk_ref[...],
                         preferred_element_type=jnp.float32) + bk_ref[...]
            k_scratch[:, pl.ds(r0, Tq), :] = (
                kc.reshape(Bt, Tq, Cq).astype(k_scratch.dtype))
            return carry

        lax.fori_loop(0, nq, _k_chunk, 0, unroll=True)

    # -- Q for the current query tile (1/sqrt(C) folded into Q)
    q0 = pl.multiple_of(qi * Tq, Tq)
    xq = x_ref[:, pl.ds(q0, Tq), :]                               # (Bt, Tq, C)
    q = jnp.dot(xq.reshape(Bt * Tq, C), wq_ref[...],
                preferred_element_type=jnp.float32) + bq_ref[...]
    q = (q * inv_sqrt_c).reshape(Bt, Tq, Cq).astype(x_ref.dtype)

    # -- scores: contract last dims of Q and K (no explicit K^T)
    scores = lax.dot_general(
        q, k_scratch[...],
        dimension_numbers=(((2,), (2,)), ((0,), (0,))),
        preferred_element_type=jnp.float32)                       # (Bt, Tq, N)

    # sigmoid via tanh: one EUP op per score element instead of exp + recip.
    att = 0.5 * (1.0 + jnp.tanh(0.5 * scores))
    # sigmoid output is bounded in (0,1): exp cannot overflow -> no max-shift.
    e = jnp.exp(att)
    att = e * pl.reciprocal(jnp.sum(e, axis=-1, keepdims=True), approx=True)

    attn_ref[...] = att.astype(attn_ref.dtype)
    asum_ref[...] += jnp.sum(att, axis=1, keepdims=True)          # (Bt, 1, N)

    # -- last query tile: pooled output  mean_n(A @ x) == mean_rows(A) @ x
    @pl.when(qi == pl.num_programs(1) - 1)
    def _finalize():
        a_bar = (asum_ref[...] * (1.0 / N)).astype(x_ref.dtype)   # (Bt, 1, N)
        pooled = lax.dot_general(
            a_bar, x_ref[...],
            dimension_numbers=(((2,), (1,)), ((0,), (0,))),
            preferred_element_type=jnp.float32)                   # (Bt, 1, C)
        out_ref[...] = pooled.astype(out_ref.dtype)


def _physical_vmem_bytes():
    """Physical VMEM per TensorCore; conservative 64 MiB (v7x) fallback."""
    try:
        v = getattr(pltpu.get_tpu_info(), "vmem_capacity_bytes", None)
        if v:
            return int(v)
    except Exception:
        pass
    return 64 * 2**20


def _pick_query_tile(n, *, max_tile=512, sublane=8):
    """Largest divisor of n <= max_tile, preferring multiples of 128
    (lane-dense attention stores / full MXU output tiles), then sublane
    multiples; falls back to n (no tiling)."""
    if n <= max_tile:
        return n
    for mult in (128, sublane, 1):
        t = (max_tile // mult) * mult
        while t >= mult:
            if n % t == 0:
                return t
            t -= mult
    return n


def _pick_batch_block(b, per_b_bytes, budget):
    """Largest divisor of b fitting the VMEM budget, preferring an even, >=2
    batch grid so both v7x TensorCores get work on the 'parallel' axis."""
    cap = max(1, min(b, budget // max(per_b_bytes, 1)))
    divs = [d for d in range(1, cap + 1) if b % d == 0]
    if not divs:
        return 1
    even = [d for d in divs if (b // d) >= 2 and (b // d) % 2 == 0]
    return max(even) if even else max(divs)


def sero_forward(x, wq, bq, wk, bk, *, compute_dtype=None,
                 attn_dtype=jnp.float32, block_q=None, block_b=None):
    """SERO forward.

    x      : (B, N, C) float32
    wq, wk : (C, Cq)   (transposed vs. torch nn.Linear weight)
    bq, bk : (1, Cq)
    compute_dtype: optional dtype (e.g. jnp.bfloat16) for x / Wq / Wk on the
                   MXU; accumulation and softmax stay f32.
    attn_dtype: dtype of the returned (B, N, N) attention (bf16 halves the
                dominant HBM writeback; softmax math stays f32).
    Returns (out (B, C) f32, attention (B, N, N) attn_dtype).
    """
    B, N, C = x.shape
    Cq = wq.shape[1]

    if compute_dtype is not None:
        x = x.astype(compute_dtype)
        wq = wq.astype(compute_dtype)
        wk = wk.astype(compute_dtype)
    bq = bq.astype(jnp.float32).reshape(1, Cq)
    bk = bk.astype(jnp.float32).reshape(1, Cq)

    itemsize = jnp.dtype(x.dtype).itemsize
    attn_isz = jnp.dtype(attn_dtype).itemsize
    sublane = 16 if itemsize == 2 else 8

    # Query tile: bounds the live (Tq, N) score/attn tile for large N.
    if block_q is not None:
        assert N % block_q == 0, f"block_q={block_q} must divide N={N}"
        Tq = block_q
    else:
        Tq = _pick_query_tile(N, max_tile=512, sublane=sublane)

    budget = 12 * 1024 * 1024   # per-step VMEM budget for one batch block

    def per_b_bytes(tq):
        # Honest accounting: x and attn tiles are double-buffered by the
        # pipeline; the score tile and K-projection chunk are live f32 temps.
        return (2 * N * C * itemsize        # resident x block (double-buffered)
                + N * Cq * itemsize         # K scratch
                + tq * Cq * 4               # Q / K-projection f32 chunk temp
                + 2 * tq * N * attn_isz     # attn output tile (double-buffered)
                + tq * N * 4                # f32 score / softmax tile
                + N * 4 + 2 * C * 4)        # column-sum accum + pooled out

    if block_q is None:
        # Shrink Tq for very large N so a single batch element fits the budget.
        while (per_b_bytes(Tq) > budget and Tq % 2 == 0
               and (Tq // 2) % sublane == 0 and N % (Tq // 2) == 0):
            Tq //= 2

    if block_b is not None:
        assert B % block_b == 0, f"block_b={block_b} must divide B={B}"
        Bt = block_b
    else:
        Bt = _pick_batch_block(B, per_b_bytes(Tq), budget)

    grid = (B // Bt, N // Tq)

    weight_bytes = 2 * (C * Cq * itemsize + Cq * 4)
    est_vmem = Bt * per_b_bytes(Tq) + 2 * weight_bytes

    # Generation-aware VMEM limit: ~85% of physical (v7x has 64 MiB per TC).
    vmem_cap = int(_physical_vmem_bytes() * 0.85)
    vmem_limit = int(min(vmem_cap, max(32 * 2**20, 2 * est_vmem)))

    cost = pl.CostEstimate(
        flops=2 * B * (2 * N * C * Cq + N * N * Cq + N * C),
        transcendentals=2 * B * N * N,   # tanh (sigmoid) + softmax exp
        bytes_accessed=(x.size * itemsize + 2 * C * Cq * itemsize
                        + B * N * N * attn_isz + B * C * 4),
    )

    grid_spec = pltpu.PrefetchScalarGridSpec(
        num_scalar_prefetch=0,
        grid=grid,
        in_specs=[
            pl.BlockSpec((Bt, N, C), lambda b, q: (b, 0, 0)),   # x (resident over q)
            pl.BlockSpec((C, Cq), lambda b, q: (0, 0)),         # Wq (full)
            pl.BlockSpec((1, Cq), lambda b, q: (0, 0)),         # bq
            pl.BlockSpec((C, Cq), lambda b, q: (0, 0)),         # Wk (full)
            pl.BlockSpec((1, Cq), lambda b, q: (0, 0)),         # bk
        ],
        out_specs=[
            pl.BlockSpec((Bt, 1, C), lambda b, q: (b, 0, 0)),   # pooled output
            pl.BlockSpec((Bt, Tq, N), lambda b, q: (b, q, 0)),  # attention tile
        ],
        scratch_shapes=[
            pltpu.VMEM((Bt, N, Cq), x.dtype),      # K, computed once per batch block
            pltpu.VMEM((Bt, 1, N), jnp.float32),   # running column-sums of A
        ],
    )

    out3, attn = pl.pallas_call(
        _sero_kernel,
        out_shape=(
            jax.ShapeDtypeStruct((B, 1, C), jnp.float32),
            jax.ShapeDtypeStruct((B, N, N), attn_dtype),
        ),
        grid_spec=grid_spec,
        compiler_params=pltpu.CompilerParams(
            dimension_semantics=("parallel", "arbitrary"),
            vmem_limit_bytes=vmem_limit,
        ),
        cost_estimate=cost,
    )(x, wq, bq, wk, bk)

    return out3.reshape(B, C), attn


def init_sero_params(key, hid_dim, upscale=1.0):
    """Deterministic param init mirroring nn.Linear shapes (stored transposed)."""
    out_dim = round(upscale * hid_dim)
    k1, k2, k3, k4 = jax.random.split(key, 4)
    bound = 1.0 / math.sqrt(hid_dim)
    wq = jax.random.uniform(k1, (hid_dim, out_dim), jnp.float32, -bound, bound)
    bq = jax.random.uniform(k2, (1, out_dim), jnp.float32, -bound, bound)
    wk = jax.random.uniform(k3, (hid_dim, out_dim), jnp.float32, -bound, bound)
    bk = jax.random.uniform(k4, (1, out_dim), jnp.float32, -bound, bound)
    return wq, bq, wk, bk


def _reference(x, wq, bq, wk, bk):
    q = x @ wq + bq
    k = x @ wk + bk
    att = jax.nn.sigmoid(jnp.einsum("bnc,bmc->bnm", q, k) / jnp.sqrt(x.shape[-1]))
    att = jax.nn.softmax(att, axis=-1)
    out = jnp.einsum("bnm,bmc->bnc", att, x).mean(axis=1)
    return out, att


if __name__ == "__main__":
    key = jax.random.PRNGKey(0)
    k_x, k_p = jax.random.split(key)

    B, N, hid_dim = 2, 8, 32
    x = jax.random.normal(k_x, (B, N, hid_dim), dtype=jnp.float32)
    wq, bq, wk, bk = init_sero_params(k_p, hid_dim, upscale=1.0)

    ref_out, ref_attn = _reference(x, wq, bq, wk, bk)

    # f32 path (tight check; approx reciprocal gives ~1e-4 relative error)
    out, attn = sero_forward(x, wq, bq, wk, bk)
    out = jax.block_until_ready(out)
    attn = jax.block_until_ready(attn)
    assert out.shape == (B, hid_dim)
    assert attn.shape == (B, N, N)
    assert jnp.allclose(out, ref_out, atol=5e-3, rtol=5e-3), \
        float(jnp.max(jnp.abs(out - ref_out)))
    assert jnp.allclose(attn, ref_attn, atol=5e-3, rtol=5e-3), \
        float(jnp.max(jnp.abs(attn - ref_attn)))

    # bf16 MXU path + bf16 attention writeback (f32 accumulation): looser tol
    out_bf, attn_bf = sero_forward(x, wq, bq, wk, bk,
                                   compute_dtype=jnp.bfloat16,
                                   attn_dtype=jnp.bfloat16)
    out_bf = jax.block_until_ready(out_bf)
    attn_bf = jax.block_until_ready(attn_bf).astype(jnp.float32)
    assert jnp.allclose(out_bf, ref_out, atol=5e-2, rtol=5e-2), \
        float(jnp.max(jnp.abs(out_bf - ref_out)))
    assert jnp.allclose(attn_bf, ref_attn, atol=5e-2, rtol=5e-2), \
        float(jnp.max(jnp.abs(attn_bf - ref_attn)))

    print("KERNEL_OK")
</pallas_src>

<mosaic_0001>
module attributes {stable_mosaic.version = 11 : i64} {
  func.func @_sero_kernel(%arg0: i32, %arg1: i32, %arg2: memref<1x8x32xf32, #tpu.memory_space<vmem>>, %arg3: memref<32x32xf32, #tpu.memory_space<vmem>>, %arg4: memref<1x32xf32, #tpu.memory_space<vmem>>, %arg5: memref<32x32xf32, #tpu.memory_space<vmem>>, %arg6: memref<1x32xf32, #tpu.memory_space<vmem>>, %arg7: memref<1x1x32xf32, #tpu.memory_space<vmem>>, %arg8: memref<1x8x8xf32, #tpu.memory_space<vmem>>, %arg9: memref<1x8x32xf32, #tpu.memory_space<vmem>>, %arg10: memref<1x1x8xf32, #tpu.memory_space<vmem>>) attributes {dimension_semantics = [#tpu.dimension_semantics<parallel>, #tpu.dimension_semantics<arbitrary>], iteration_bounds = array<i64: 2, 1>, scalar_prefetch = 0 : i64, scratch_operands = 2 : i64, tpu.core_type = #tpu.core_type<tc>, window_params = [{transform_indices = @transform_0, window_bounds = array<i64: 1, 8, 32>}, {pipeline_mode = #tpu.pipeline_mode<synchronous>, transform_indices = @transform_1, window_bounds = array<i64: 32, 32>}, {pipeline_mode = #tpu.pipeline_mode<synchronous>, transform_indices = @transform_2, window_bounds = array<i64: 1, 32>}, {pipeline_mode = #tpu.pipeline_mode<synchronous>, transform_indices = @transform_3, window_bounds = array<i64: 32, 32>}, {pipeline_mode = #tpu.pipeline_mode<synchronous>, transform_indices = @transform_4, window_bounds = array<i64: 1, 32>}, {transform_indices = @transform_5, window_bounds = array<i64: 1, 1, 32>}, {transform_indices = @transform_6, window_bounds = array<i64: 1, 8, 8>}]} {
    %c0_i32 = arith.constant 0 : i32
    %0 = arith.cmpi eq, %arg1, %c0_i32 : i32
    %1 = arith.extui %0 : i1 to i32
    %c0_i32_0 = arith.constant 0 : i32
    %2 = arith.cmpi ne, %1, %c0_i32_0 : i32
    scf.if %2 {
      %cst_27 = arith.constant 0.000000e+00 : f32
      %40 = vector.broadcast %cst_27 : f32 to vector<1x1x8xf32>
      %c0_28 = arith.constant 0 : index
      %c0_29 = arith.constant 0 : index
      %c0_30 = arith.constant 0 : index
      %41 = vector.load %arg10[%c0_28, %c0_29, %c0_30] : memref<1x1x8xf32, #tpu.memory_space<vmem>>, vector<1x1x8xf32>
      tpu.vector_store %arg10[%c0_28, %c0_29, %c0_30], %40 {strides = array<i32>} : memref<1x1x8xf32, #tpu.memory_space<vmem>>, vector<1x1x8xf32>,
      %c0_i32_31 = arith.constant 0 : i32
      %c8_i32_32 = arith.constant 8 : i32
      %42 = arith.muli %c0_i32_31, %c8_i32_32 : i32
      %43 = tpu.assume_multiple %42, 8 : i32
      %c0_33 = arith.constant 0 : index
      %44 = arith.index_cast %43 : i32 to index
      %c0_34 = arith.constant 0 : index
      %45 = vector.load %arg2[%c0_33, %44, %c0_34] : memref<1x8x32xf32, #tpu.memory_space<vmem>>, vector<1x8x32xf32>
      %46 = vector.shape_cast %45 : vector<1x8x32xf32> to vector<8x32xf32>
      %c0_35 = arith.constant 0 : index
      %c0_36 = arith.constant 0 : index
      %47 = vector.load %arg5[%c0_35, %c0_36] : memref<32x32xf32, #tpu.memory_space<vmem>>, vector<32x32xf32>
      %cst_37 = arith.constant dense<0.000000e+00> : vector<8x32xf32>
      %48 = tpu.matmul %46, %47, %cst_37 {dimension_numbers = #tpu.dot_dimension_numbers<[1], [0], [0], [1], [0, 0, 1, 1], [], []>} : vector<8x32xf32>, vector<32x32xf32>, vector<8x32xf32> -> vector<8x32xf32>
      %c0_38 = arith.constant 0 : index
      %c0_39 = arith.constant 0 : index
      %49 = vector.load %arg6[%c0_38, %c0_39] : memref<1x32xf32, #tpu.memory_space<vmem>>, vector<1x32xf32>
      %50 = vector.broadcast %49 : vector<1x32xf32> to vector<8x32xf32>
      %51 = arith.addf %48, %50 : vector<8x32xf32>
      %52 = vector.shape_cast %51 : vector<8x32xf32> to vector<1x8x32xf32>
      %c0_40 = arith.constant 0 : index
      %53 = arith.index_cast %43 : i32 to index
      %c0_41 = arith.constant 0 : index
      %54 = vector.load %arg9[%c0_40, %53, %c0_41] : memref<1x8x32xf32, #tpu.memory_space<vmem>>, vector<1x8x32xf32>
      tpu.vector_store %arg9[%c0_40, %53, %c0_41], %52 {strides = array<i32>} : memref<1x8x32xf32, #tpu.memory_space<vmem>>, vector<1x8x32xf32>,
      %c1_i32 = arith.constant 1 : i32
    } else {
    }
    %c8_i32 = arith.constant 8 : i32
    %3 = arith.muli %arg1, %c8_i32 : i32
    %4 = tpu.assume_multiple %3, 8 : i32
    %c0 = arith.constant 0 : index
    %5 = arith.index_cast %4 : i32 to index
    %c0_1 = arith.constant 0 : index
    %6 = vector.load %arg2[%c0, %5, %c0_1] : memref<1x8x32xf32, #tpu.memory_space<vmem>>, vector<1x8x32xf32>
    %7 = vector.shape_cast %6 : vector<1x8x32xf32> to vector<8x32xf32>
    %c0_2 = arith.constant 0 : index
    %c0_3 = arith.constant 0 : index
    %8 = vector.load %arg3[%c0_2, %c0_3] : memref<32x32xf32, #tpu.memory_space<vmem>>, vector<32x32xf32>
    %cst = arith.constant dense<0.000000e+00> : vector<8x32xf32>
    %9 = tpu.matmul %7, %8, %cst {dimension_numbers = #tpu.dot_dimension_numbers<[1], [0], [0], [1], [0, 0, 1, 1], [], []>} : vector<8x32xf32>, vector<32x32xf32>, vector<8x32xf32> -> vector<8x32xf32>
    %c0_4 = arith.constant 0 : index
    %c0_5 = arith.constant 0 : index
    %10 = vector.load %arg4[%c0_4, %c0_5] : memref<1x32xf32, #tpu.memory_space<vmem>>, vector<1x32xf32>
    %11 = vector.broadcast %10 : vector<1x32xf32> to vector<8x32xf32>
    %12 = arith.addf %9, %11 : vector<8x32xf32>
    %cst_6 = arith.constant 0.176776692 : f32
    %13 = vector.broadcast %cst_6 : f32 to vector<8x32xf32>
    %14 = arith.mulf %12, %13 : vector<8x32xf32>
    %15 = vector.shape_cast %14 : vector<8x32xf32> to vector<1x8x32xf32>
    %c0_7 = arith.constant 0 : index
    %c0_8 = arith.constant 0 : index
    %c0_9 = arith.constant 0 : index
    %16 = vector.load %arg9[%c0_7, %c0_8, %c0_9] : memref<1x8x32xf32, #tpu.memory_space<vmem>>, vector<1x8x32xf32>
    %cst_10 = arith.constant dense<0.000000e+00> : vector<1x8x8xf32>
    %17 = tpu.matmul %15, %16, %cst_10 {dimension_numbers = #tpu.dot_dimension_numbers<[2], [2], [1], [1], [0, 0, 0, 1, 1, 1], [0], [0]>} : vector<1x8x32xf32>, vector<1x8x32xf32>, vector<1x8x8xf32> -> vector<1x8x8xf32>
    %cst_11 = arith.constant 5.000000e-01 : f32
    %18 = vector.broadcast %cst_11 : f32 to vector<1x8x8xf32>
    %19 = arith.mulf %18, %17 : vector<1x8x8xf32>
    %20 = math.tanh %19 : vector<1x8x8xf32>
    %cst_12 = arith.constant 1.000000e+00 : f32
    %21 = vector.broadcast %cst_12 : f32 to vector<1x8x8xf32>
    %22 = arith.addf %21, %20 : vector<1x8x8xf32>
    %cst_13 = arith.constant 5.000000e-01 : f32
    %23 = vector.broadcast %cst_13 : f32 to vector<1x8x8xf32>
    %24 = arith.mulf %23, %22 : vector<1x8x8xf32>
    %25 = math.exp %24 : vector<1x8x8xf32>
    %cst_14 = arith.constant dense<0.000000e+00> : vector<1x8xf32>
    %26 = vector.multi_reduction <add>, %25, %cst_14 [2] : vector<1x8x8xf32> to vector<1x8xf32>
    %27 = vector.shape_cast %26 : vector<1x8xf32> to vector<1x8x1xf32>
    %28 = tpu.reciprocal %27 {approx = true} : vector<1x8x1xf32> -> vector<1x8x1xf32>
    %29 = vector.broadcast %28 : vector<1x8x1xf32> to vector<1x8x8xf32>
    %30 = arith.mulf %25, %29 : vector<1x8x8xf32>
    %c0_15 = arith.constant 0 : index
    %c0_16 = arith.constant 0 : index
    %c0_17 = arith.constant 0 : index
    %31 = vector.load %arg8[%c0_15, %c0_16, %c0_17] : memref<1x8x8xf32, #tpu.memory_space<vmem>>, vector<1x8x8xf32>
    tpu.vector_store %arg8[%c0_15, %c0_16, %c0_17], %30 {strides = array<i32>} : memref<1x8x8xf32, #tpu.memory_space<vmem>>, vector<1x8x8xf32>,
    %c0_18 = arith.constant 0 : index
    %c0_19 = arith.constant 0 : index
    %c0_20 = arith.constant 0 : index
    %32 = vector.load %arg10[%c0_18, %c0_19, %c0_20] : memref<1x1x8xf32, #tpu.memory_space<vmem>>, vector<1x1x8xf32>
    %cst_21 = arith.constant dense<0.000000e+00> : vector<1x8xf32>
    %33 = vector.multi_reduction <add>, %30, %cst_21 [1] : vector<1x8x8xf32> to vector<1x8xf32>
    %34 = vector.shape_cast %33 : vector<1x8xf32> to vector<1x1x8xf32>
    %35 = arith.addf %32, %34 : vector<1x1x8xf32>
    %c0_22 = arith.constant 0 : index
    %c0_23 = arith.constant 0 : index
    %c0_24 = arith.constant 0 : index
    %36 = vector.load %arg10[%c0_22, %c0_23, %c0_24] : memref<1x1x8xf32, #tpu.memory_space<vmem>>, vector<1x1x8xf32>
    tpu.vector_store %arg10[%c0_22, %c0_23, %c0_24], %35 {strides = array<i32>} : memref<1x1x8xf32, #tpu.memory_space<vmem>>, vector<1x1x8xf32>,
    %c0_i32_25 = arith.constant 0 : i32
    %37 = arith.cmpi eq, %arg1, %c0_i32_25 : i32
    %38 = arith.extui %37 : i1 to i32
    %c0_i32_26 = arith.constant 0 : i32
    %39 = arith.cmpi ne, %38, %c0_i32_26 : i32
    scf.if %39 {
      %c0_27 = arith.constant 0 : index
      %c0_28 = arith.constant 0 : index
      %c0_29 = arith.constant 0 : index
      %40 = vector.load %arg10[%c0_27, %c0_28, %c0_29] : memref<1x1x8xf32, #tpu.memory_space<vmem>>, vector<1x1x8xf32>
      %cst_30 = arith.constant 1.250000e-01 : f32
      %41 = vector.broadcast %cst_30 : f32 to vector<1x1x8xf32>
      %42 = arith.mulf %40, %41 : vector<1x1x8xf32>
      %c0_31 = arith.constant 0 : index
      %c0_32 = arith.constant 0 : index
      %c0_33 = arith.constant 0 : index
      %43 = vector.load %arg2[%c0_31, %c0_32, %c0_33] : memref<1x8x32xf32, #tpu.memory_space<vmem>>, vector<1x8x32xf32>
      %cst_34 = arith.constant dense<0.000000e+00> : vector<1x1x32xf32>
      %44 = tpu.matmul %42, %43, %cst_34 {dimension_numbers = #tpu.dot_dimension_numbers<[2], [1], [1], [2], [0, 0, 0, 1, 1, 2], [0], [0]>} : vector<1x1x8xf32>, vector<1x8x32xf32>, vector<1x1x32xf32> -> vector<1x1x32xf32>
      %c0_35 = arith.constant 0 : index
      %c0_36 = arith.constant 0 : index
      %c0_37 = arith.constant 0 : index
      %45 = vector.load %arg7[%c0_35, %c0_36, %c0_37] : memref<1x1x32xf32, #tpu.memory_space<vmem>>, vector<1x1x32xf32>
      tpu.vector_store %arg7[%c0_35, %c0_36, %c0_37], %44 {strides = array<i32>} : memref<1x1x32xf32, #tpu.memory_space<vmem>>, vector<1x1x32xf32>,
    } else {
    }
    return
  }
  func.func @transform_0(%arg0: i32, %arg1: i32) -> (i32, i32, i32) {
    %c0_i32 = arith.constant 0 : i32
    %c0_i32_0 = arith.constant 0 : i32
    %c0_i32_1 = arith.constant 0 : i32
    return %arg0, %c0_i32, %c0_i32_0 : i32, i32, i32
  }
  func.func @transform_1(%arg0: i32, %arg1: i32) -> (i32, i32) {
    %c0_i32 = arith.constant 0 : i32
    %c0_i32_0 = arith.constant 0 : i32
    %c0_i32_1 = arith.constant 0 : i32
    return %c0_i32, %c0_i32_0 : i32, i32
  }
  func.func @transform_2(%arg0: i32, %arg1: i32) -> (i32, i32) {
    %c0_i32 = arith.constant 0 : i32
    %c0_i32_0 = arith.constant 0 : i32
    %c0_i32_1 = arith.constant 0 : i32
    return %c0_i32, %c0_i32_0 : i32, i32
  }
  func.func @transform_3(%arg0: i32, %arg1: i32) -> (i32, i32) {
    %c0_i32 = arith.constant 0 : i32
    %c0_i32_0 = arith.constant 0 : i32
    %c0_i32_1 = arith.constant 0 : i32
    return %c0_i32, %c0_i32_0 : i32, i32
  }
  func.func @transform_4(%arg0: i32, %arg1: i32) -> (i32, i32) {
    %c0_i32 = arith.constant 0 : i32
    %c0_i32_0 = arith.constant 0 : i32
    %c0_i32_1 = arith.constant 0 : i32
    return %c0_i32, %c0_i32_0 : i32, i32
  }
  func.func @transform_5(%arg0: i32, %arg1: i32) -> (i32, i32, i32) {
    %c0_i32 = arith.constant 0 : i32
    %c0_i32_0 = arith.constant 0 : i32
    %c0_i32_1 = arith.constant 0 : i32
    return %arg0, %c0_i32, %c0_i32_0 : i32, i32, i32
  }
  func.func @transform_6(%arg0: i32, %arg1: i32) -> (i32, i32, i32) {
    %c0_i32 = arith.constant 0 : i32
    %c0_i32_0 = arith.constant 0 : i32
    return %arg0, %arg1, %c0_i32 : i32, i32, i32
  }
}

</mosaic_0001>

<bundles_post_ra>
// kernel: tpu_custom_call.1
= control target key start
LH: loop header
LB: loop body
LE: loop exit
PB: predicated region body
PF: predicated region fallthrough
CT: control target
= control target key end

     0   :  { %s1482_s0 = inlined_call_operand.hbm [shape: f32[2,8,32], index: 0, kind: input, shape index: {}]   ;;  %s1483_s1 = inlined_call_operand.hbm [shape: f32[32,32], index: 1, kind: input, shape index: {}]   ;;  %s1484_s2 = inlined_call_operand.vmem [shape: f32[1,32], index: 2, kind: input, shape index: {}]   ;;  %s1485_s3 = inlined_call_operand.hbm [shape: f32[32,32], index: 3, kind: input, shape index: {}]   ;;  %s1486_s4 = inlined_call_operand.vmem [shape: f32[1,32], index: 4, kind: input, shape index: {}]   ;;  %s1487_s5 = inlined_call_operand.hbm [shape: f32[2,1,32], index: 5, kind: output, shape index: {0}]   ;;  %s1488_s6 = inlined_call_operand.hbm [shape: f32[2,8,8], index: 6, kind: output, shape index: {1}]  }
   0x1   :  { %1492 = sst [smem:[#allocation17_spill]] %s1483_s1 }
   0x2   :  { %1493 = sst [smem:[#allocation18_spill]] %s1485_s3 }
   0x3   :  { %12 = vsyncpa [#allocation5], 0 }
   0x4   :  { %14 = vsyncpa [#allocation5 + $0x1], 0 }
   0x5   :  { %15 = vsyncpa [#allocation8], 0 }
   0x6   :  { %16 = vsyncpa [#allocation6], 0 }
   0x7   :  { %18 = vsyncpa [#allocation6 + $0x1], 0 }
   0x8   :  { %19 = vsyncpa [#allocation12], 0 }
   0x9   :  { %21 = vsyncpa [#allocation12 + $0x1], 0  ;;  %s1253_s21 = smov 0   ;;  %s1255_s22 = smov 0  }
   0xa   :  { %s1257_s23 = smov 0   ;;  %s1259_s24 = smov 0  }
   0xb   :  { %s1261_s25 = smov 0   ;;  %s1263_s26 = smov 0  }
   0xc LB: > { %s844_s27 = sadd.s32 4294967295, %s1207_s26   ;;  %s845_s28 = sadd.s32 4294967294, %s1207_s26   ;;  %s1207_s26 = sphi %s1263_s26, %s27_s26   ;;  %s1203_s25 = sphi %s1261_s25, %s1512_s25   ;;  %s1199_s24 = sphi %s1259_s24, %s1511_s24   ;;  %s1195_s23 = sphi %s1257_s23, %s1510_s23   ;;  %s1191_s22 = sphi %s1255_s22, %s1509_s22   ;;  %s1187_s21 = sphi %s1253_s21, %s1508_s21  }
   0xd   : > { %p59_p0 = scmp.ne.s32.totalorder %s1191_s22, %s1187_s21  ;;  %p1287_p1 = scmp.eq.s32.totalorder %s844_s27, 0 }
   0xe   : > { %p1291_p2 = scmp.eq.s32.totalorder %s844_s27, 1  ;;  %p173_p3 = scmp.eq.s32.totalorder %s845_s28, 1 }
   0xf   : > { %s1494_s29 = scalar_select %p1287_p1, 1, 0 }
  0x10   : > { %p1297_p4 = por %p1287_p1, %p59_p0  ;;  %p846_p5 = scmp.ge.s32.totalorder %s1207_s26, 1 }
  0x11   : > { %p1302_p6 = por %p173_p3, %p59_p0  ;;  %p208_p7 = scmp.lt.s32.totalorder %s1207_s26, 3 }
  0x12   : > { %s1496_s7 = scalar_select %p1297_p4, 1, 0 }
  0x13   : > { %s1497_s8 = scalar_select %p1302_p6, 1, 0 }
  0x14   : > { %p1307_p8 = pnand %p846_p5, %p208_p7  ;;  %s1209_s10 = smov [#allocation7]  }
  0x15   : > { %s220_s11 = sshll.u32 %s1209_s10, 4  ;;  %s1210_s13 = smov [#allocation9]   ;;  %s221_s11 = int_to_ptr.vmem [resolvable:$true] %s220_s11 }
  0x16   : > { %p929_p9 = pneg %p1307_p8  ;;  %s236_s14 = sshll.u32 %s1210_s13, 4  ;;  %s237_s14 = int_to_ptr.vmem [resolvable:$true] %s236_s14 }
  0x17   : > { %s1024_s15 = scalar_lea.vmem %s221_s11, 512  ;;  %p1032_p5 = scmp.lt.s32.totalorder %s221_s11, %s221_s11 }
  0x18   : > { %p1316_p11 = pnand %p929_p9, %p1287_p1  ;;  %p1025_p13 = scmp.ne.s32.totalorder %s221_s11, %s1024_s15 }
  0x19   : > { %p1033_p7 = scmp.lt.s32.totalorder %s1024_s15, %s1024_s15 }
  0x1a   : > { %p1015_p12 = pneg %p1316_p11 }
  0x1b   : > { %p1034_p10 = por %p1033_p7, %p1032_p5 }
  0x1c   : > { %p1027_p0 = pnand %p1025_p13, %p1015_p12 }
  0x1e   : > { %p1028_p3 = pneg %p1027_p0 }
  0x20   : > { %p1035_p9 = pnand %p1034_p10, %p1028_p3 }
  0x22   : > { %1038 = shalt.err (!%p1035_p9)
}
  0x23   : > { %s1211_s16 = smov 128   ;;  %s1212_s17 = smov 8  }
  0x24   : > { %s1500_s1 = sld [smem:[#allocation17_spill]]  ;;  %s1050_s20 = scalar_lea.vmem %s237_s14, 512 }
  0x25   : > { %p1051_p6 = scmp.ne.s32.totalorder %s237_s14, %s1050_s20  ;;  %p1058_p1 = scmp.lt.s32.totalorder %s237_s14, %s237_s14 }
  0x26   : > { %p1059_p4 = scmp.lt.s32.totalorder %s1050_s20, %s1050_s20 }
  0x27   : > { %p1053_p13 = pnand %p1051_p6, %p1015_p12 }
  0x28   : > { %p1060_p5 = por %p1059_p4, %p1058_p1 }
  0x29   : > { %p1054_p0 = pneg %p1053_p13 }
  0x2a   : > { %932 = dma.hbm_to_vmem [thread:$0]  (!%p1316_p11), %s1500_s1, 512, %s221_s11, [#allocation8], %s1211_s16, %s1211_s16, %s1212_s17  }
  0x2b   : > { %p1061_p10 = pnand %p1060_p5, %p1054_p0 }
  0x2d   : > { %1064 = shalt.err (!%p1061_p10)
}
  0x2e   : > { %s1501_s3 = sld [smem:[#allocation18_spill]]  ;;  %s39_s10 = sadd.s32 1, %s1203_s25 }
  0x2f   : > { %s46_s11 = sadd.s32 1, %s1195_s23  ;;  %p41_p1 = scmp.ge.s32.totalorder %s39_s10, 2 }
  0x30   : > { %p53_p4 = scmp.ne.s32.totalorder %s1195_s23, %s1191_s22  ;;  %p54_p6 = scmp.eq.s32.totalorder %s1207_s26, 0 }
  0x31   : > { %p949_p12 = scmp.lt.s32.totalorder %s1207_s26, 2  ;;  %s1514_s10 = smov (%p41_p1, %s39_s10), 0 }
  0x32   : > { %p55_p3 = por %p54_p6, %p53_p4  ;;  %p1348_p7 = por %p1291_p2, %p53_p4 }
  0x33   : > { %s43_s13 = ssub.s32 %s1203_s25, %s1514_s10  ;;  %s253_s15 = sand.u32 1, %s1195_s23  }
  0x34   : > { %935 = dma.hbm_to_vmem [thread:$0]  (!%p1316_p11), %s1501_s3, 512, %s237_s14, [#allocation8], %s1211_s16, %s1211_s16, %s1212_s17  }
  0x35   : > { %p44_p9 = scmp.eq.s32.totalorder %s43_s13, 0  ;;  %s850_s14 = sshll.u32 %s253_s15, 3 }
  0x36   : > { %s851_s16 = sshll.u32 %s1203_s25, 7  ;;  %s257_s27 = scalar_lea.vmem [#allocation4], %s850_s14 }
  0x37   : > { %s1357_s17 = scalar_select %p44_p9, %s1195_s23, %s46_s11  }
  0x38   : > { %s262_s20 = scalar_lea.hbm %s1482_s0, %s851_s16  ;;  %s264_s28 = sshll.u32 %s257_s27, 4  ;;  %s265_s28 = int_to_ptr.vmem [resolvable:$true] %s264_s28 }
  0x39   : > { %p1364_p11 = pnand %p949_p12, %p55_p3  ;;  %s254_s1 = scalar_lea.sflag [#allocation5], %s253_s15 }
  0x3a   : > { %s1078_s13 = scalar_lea.vmem %s265_s28, 128  ;;  %s1213_s11 = smov [#allocation4]  }
  0x3b   : > { %p1067_p2 = pneg %p1364_p11  ;;  %p1079_p13 = scmp.ne.s32.totalorder %s265_s28, %s1078_s13 }
  0x3c   : > { %s1083_s3 = sshll.u32 %s1213_s11, 4  ;;  %s1084_s3 = int_to_ptr.vmem [resolvable:$false] %s1083_s3 }
  0x3d   : > { %p1081_p0 = pnand %p1079_p13, %p1067_p2  ;;  %s1085_s16 = scalar_lea.vmem %s1084_s3, 256 }
  0x3e   : > { %p1086_p10 = scmp.lt.s32.totalorder %s265_s28, %s1084_s3  ;;  %p1087_p1 = scmp.lt.s32.totalorder %s1085_s16, %s1078_s13 }
  0x3f   : > { %p1082_p5 = pneg %p1081_p0 }
  0x40   : > { %p1088_p4 = por %p1087_p1, %p1086_p10 }
  0x42   : > { %p1089_p6 = pnand %p1088_p4, %p1082_p5 }
  0x44   : > { %1092 = shalt.err (!%p1089_p6)
}
  0x45   : > { %939 = dma.hbm_to_vmem [thread:$0]  (!%p1364_p11), %s262_s20, 128, %s265_s28, %s254_s1  }
  0x46   : > { %273 = sbr.rel (%p1307_p8) target bundleno = 911 (0x38f), region = 40  ;;  %s1375_s15 = sand.u32 (!%p1307_p8), 1, %s1191_s22  }
  0x47   : > { %s853_s14 = sshll.u32 (!%p1307_p8), %s1375_s15, 3  ;;  %s276_s18 = scalar_lea.sflag (!%p1307_p8), [#allocation5], %s1375_s15 }
  0x48   : > { %s279_s3 = scalar_lea.vmem (!%p1307_p8), [#allocation4], %s853_s14  ;;  %p1504_p12 = scmp.ne.s32.totalorder (!%p1307_p8), %s1496_s7, 0 }
  0x4b   : > { %1170 = dma.done.wait (%p1504_p12), %s276_s18, 128  }
  0x4c   : > { %1172 = vsyncadd (%p1504_p12), %s276_s18, 4294967168  ;;  %p1505_p3 = scmp.ne.s32.totalorder %s1494_s29, 0 }
  0x4e   : > { %1174 = dma.done.wait (%p1505_p3), [#allocation8], 1024  }
  0x4f   : > { %1176 = vsyncadd (%p1505_p3), [#allocation8], 4294966272  ;;  %v1214_v0 = vmov 0.0   ;;  %vm1215_vm0 = vmmov 0   ;;  %v330_v1 = vld [vmem:[#allocation9 + $0x18] sm:$0xff]  ;;  %v329_v2 = vld [vmem:[#allocation9 + $0x10] sm:$0xff] }
  0x50   : > { %883 = vmatprep.subr.mxu0 %v1214_v0  ;;  %891 = vmatprep.mubr.msk.f32.mxu0 %vm1215_vm0, %v1214_v0  ;;  %v419_v3 = vld [vmem:[#allocation7 + $0x18] sm:$0xff]  ;;  %v328_v4 = vld [vmem:[#allocation9 + $0x8] sm:$0xff]  ;;  %v418_v5 = vld [vmem:[#allocation7 + $0x10] sm:$0xff]  ;;  %vm338_vm1 = vcmask 261120   ;;  %vm324_vm2 = vcmask 57344   ;;  %vm585_vm3 = vcmask 64512  }
  0x51   : > { %894 = vmatprep.subr.mxu1 %v1214_v0  ;;  %902 = vmatprep.mubr.msk.f32.mxu1 %vm1215_vm0, %v1214_v0  ;;  %v417_v6 = vld [vmem:[#allocation7 + $0x8] sm:$0xff]  ;;  %v327_v7 = vld [vmem:[#allocation9] sm:$0xff]  ;;  %v326_v8 = vld [vmem:[%s279_s3] sm:$0xff]  ;;  %325 = vst.msk [vmem:[#allocation3] sm:$0x1] %vm324_vm2, %v1214_v0  ;;  %s319_s19 = scalar_lea.vmem [#allocation11], %s853_s14 }
  0x52   : > { %884 = vmatpush3.msra.mxu0 %v330_v1  ;;  %895 = vmatpush3.msra.mxu1 %v419_v3  ;;  %v416_v9 = vld [vmem:[#allocation7] sm:$0xff]  ;;  %s866_s20 = sshll.u32 %s1199_s24, 7  ;;  %s716_s27 = sshll.u32 %s319_s19, 4  ;;  %s717_s27 = int_to_ptr.vmem [resolvable:$true] %s716_s27 }
  0x53   : > { %885 = vmatprep.subr.mxu0 %v1214_v0  ;;  %896 = vmatprep.subr.mxu1 %v1214_v0  ;;  %v857_v10 = vld [vmem:[%s1486_s4] ss:$0 sm:$0xff]  ;;  %s714_s13 = scalar_lea.hbm %s1488_s6, %s866_s20  ;;  %s689_s11 = scalar_lea.sflag [#allocation12], %s1375_s15 }
  0x54   : > { %886 = vmatpush3.msra.mxu0 %v329_v2  ;;  %897 = vmatpush3.msra.mxu1 %v418_v5  ;;  %v859_v15 = vld [vmem:[%s1484_s2] ss:$0 sm:$0xff]  ;;  %s1093_s16 = scalar_lea.vmem %s717_s27, 128  ;;  %s1216_s14 = smov [#allocation11]  }
  0x55   : > { %887 = vmatprep.subr.mxu0 %v1214_v0  ;;  %898 = vmatprep.subr.mxu1 %v1214_v0  ;;  %p1094_p8 = scmp.ne.s32.totalorder %s717_s27, %s1093_s16  ;;  %s1097_s18 = sshll.u32 %s1216_s14, 4  ;;  %s1098_s18 = int_to_ptr.vmem [resolvable:$false] %s1097_s18 }
  0x56   : > { %888 = vmatpush3.msra.mxu0 %v328_v4  ;;  %899 = vmatpush3.msra.mxu1 %v417_v6  ;;  %s1099_s3 = scalar_lea.vmem %s1098_s18, 256  ;;  %p1100_p2 = scmp.lt.s32.totalorder %s717_s27, %s1098_s18 }
  0x57   : > { %889 = vmatprep.subr.mxu0 %v1214_v0  ;;  %900 = vmatprep.subr.mxu1 %v1214_v0  ;;  %p1095_p9 = pnand %p1094_p8, %p1348_p7  ;;  %p1101_p13 = scmp.lt.s32.totalorder %s1099_s3, %s1093_s16 }
  0x58   : > { %890 = vmatpush3.msra.mxu0 %v327_v7  ;;  %901 = vmatpush3.msra.mxu1 %v416_v9  ;;  %v592_v38 = vld [vmem:[#allocation3] sm:$0x1] }
  0x59   : > { %892 = vmatmul.mubr.msk.f32.vlgmr.msra.gmra.mxu0 %vm338_vm1, %v326_v8  ;;  %903 = vmatmul.mubr.msk.f32.vlgmr.msra.gmra.mxu1 %vm338_vm1, %v326_v8  ;;  %p1096_p11 = pneg %p1095_p9  ;;  %p1102_p0 = por %p1101_p13, %p1100_p2 }
  0x5a   : > { %905 = vmatprep.subr.mxu0 %v1214_v0  ;;  %907 = vmatprep.mubr.msk.f32.mxu0 %vm1215_vm0, %v1214_v0 }
  0x5b   : > { %910 = vmatprep.subr.mxu1 %v1214_v0  ;;  %912 = vmatprep.mubr.msk.f32.mxu1 %vm1215_vm0, %v1214_v0  ;;  %p1103_p5 = pnand %p1102_p0, %p1096_p11 }
  0x5c   : > { %911 = vmatpush3.msra.mxu1 %v326_v8 }
 0x119   : > { %v408_v11 = vpop.f32.mrf.mxu0  ;;  %v497_v13 = vpop.f32.mrf.mxu1 }
 0x11a   : > { %v409_v12 = vadd.f32 %v857_v10, %v408_v11  ;;  %v498_v17 = vadd.f32 %v859_v15, %v497_v13 }
 0x11b   : > { %v893_v14 = vpop.f32.mrf.mxu0  ;;  %v904_v16 = vpop.f32.mrf.mxu1 }
 0x11c   : > { %412 = vst.msk [vmem:[#allocation2] sm:$0xff] %vm338_vm1, %v409_v12  ;;  %v501_v18 = vmul.f32 0.17677669, %v498_v17 }
 0x123   : > { %v502_v19 = vld [vmem:[#allocation2] sm:$0xff] }
 0x124   : > { %906 = vmatpush3.xpose.msk.msra.mxu0 %vm338_vm1, %v502_v19 }
 0x127   : > { %908 = vmatmul.mubr.msk.f32.vlgmr.msra.gmra.mxu0 %vm338_vm1, %v501_v18 }
 0x1e7   : > { %v575_v20 = vpop.f32.mrf.mxu0 }
 0x1e8   : > { %v579_v21 = vmul.f32 0.5, %v575_v20 }
 0x1e9   : > { %v909_v22 = vpop.f32.mrf.mxu0 }
 0x1ea   : > { %1007 = vtanh.f32 %v579_v21 }
 0x1f7   : > { %v1008_v23 = vpop.eup %1007 }
 0x1f8   : > { %v581_v24 = vadd.f32 1.0, %v1008_v23 }
 0x1fa   : > { %v582_v25 = vmul.f32 0.5, %v581_v24 }
 0x1fc   : > { %v583_v26 = vmul.f32 1.442695, %v582_v25 }
 0x1fe   : > { %1009 = vpow2.f32 %v583_v26 }
 0x20b   : > { %v1010_v27 = vpop.eup %1009 }
 0x20c   : > { %v586_v28 = vsel %vm585_vm3, %v1010_v27, 0.0 }
 0x20d   : > { %587 = vadd.xlane.f32.xlu0 %v586_v28 }
 0x296   : > { %v588_v29 = vpop.xlane.xlu0 %587 }
 0x297   : > { %1011 = vrcp.f32 %v588_v29 }
 0x2a4   : > { %v1012_v30 = vpop.eup %1011 }
 0x2a5   : > { %v590_v31 = vmul.f32 %v1012_v30, %v1010_v27 }
 0x2a7   : > { %v593_v32 = vsel %vm585_vm3, %v590_v31, 0.0  ;;  %591 = vst.msk [vmem:[%s319_s19] sm:$0xff] %vm585_vm3, %v590_v31 }
 0x2a8   : > { %v594_v33 = vrot.slane %v593_v32, 4 }
 0x2aa   : > { %v595_v34 = vadd.f32 %v594_v33, %v593_v32 }
 0x2ac   : > { %v596_v35 = vrot.slane %v595_v34, 2 }
 0x2ae   : > { %v597_v36 = vadd.f32 %v596_v35, %v595_v34 }
 0x2b0   : > { %v598_v37 = vrot.slane %v597_v36, 1 }
 0x2b2   : > { %v599_v39 = vadd.f32 %v598_v37, %v597_v36 }
 0x2b4   : > { %v600_v40 = vadd.f32 %v599_v39, %v592_v38 }
 0x2b6   : > { %602 = vst.msk [vmem:[#allocation3] sm:$0x1] %vm324_vm2, %v600_v40 }
 0x2bd   : > { %v606_v41 = vld [vmem:[#allocation3] sm:$0x1] }
 0x2be   : > { %v607_v42 = vmul.f32 0.125, %v606_v41 }
 0x2c0   : > { %913 = vmatmul.mubr.msk.f32.vlgmr.msra.gmra.mxu1 %vm585_vm3, %v607_v42 }
 0x2c1   : > { %1106 = shalt.err (!%p1103_p5)
}
 0x2c2   : > { %s1107_s1 = scalar_lea.hbm %s714_s13, 128  ;;  %s1111_s9 = scalar_lea.hbm %s1488_s6, 256 }
 0x2c3   : > { %p1108_p10 = scmp.ne.s32.totalorder %s714_s13, %s1107_s1  ;;  %p1112_p6 = scmp.lt.s32.totalorder %s714_s13, %s1488_s6 }
 0x2c4   : > { %p1113_p12 = scmp.lt.s32.totalorder %s1111_s9, %s1107_s1 }
 0x2c5   : > { %p1109_p1 = pnand %p1108_p10, %p1348_p7 }
 0x2c6   : > { %p1114_p3 = por %p1113_p12, %p1112_p6 }
 0x2c7   : > { %p1110_p4 = pneg %p1109_p1 }
 0x2c9   : > { %p1115_p8 = pnand %p1114_p3, %p1110_p4 }
 0x2cb   : > { %1118 = shalt.err (!%p1115_p8)
}
 0x2cc   : > { %926 = dma.vmem_to_hbm [thread:$0]  (%p1348_p7), %s717_s27, 128, %s714_s13, %s689_s11   ;;  %vm682_vm4 = vcmask 253952  }
 0x2cd   : > { %s865_s28 = sshll.u32 %s1199_s24, 4  ;;  %s312_s30 = scalar_lea.vmem [#allocation10], %s1375_s15 }
 0x2ce   : > { %s702_s16 = sshll.u32 %s312_s30, 4  ;;  %s1434_s3 = scalar_lea.hbm %s1487_s5, %s865_s28  ;;  %s1436_s16 = int_to_ptr.vmem [resolvable:$true] %s702_s16 }
 0x2cf   : > { %s685_s1 = scalar_lea.sflag [#allocation6], %s1375_s15  ;;  %s1119_s29 = scalar_lea.vmem %s1436_s16, 16 }
 0x2d0   : > { %p1120_p9 = scmp.ne.s32.totalorder %s1436_s16, %s1119_s29  ;;  %s1217_s24 = smov [#allocation10]  }
 0x2d1   : > { %s1123_s27 = sshll.u32 %s1217_s24, 4  ;;  %s1124_s27 = int_to_ptr.vmem [resolvable:$false] %s1123_s27 }
 0x2d2   : > { %p1121_p11 = pnand %p1120_p9, %p1348_p7  ;;  %s1125_s13 = scalar_lea.vmem %s1124_s27, 32 }
 0x2d3   : > { %p1126_p13 = scmp.lt.s32.totalorder %s1436_s16, %s1124_s27  ;;  %p1127_p0 = scmp.lt.s32.totalorder %s1125_s13, %s1119_s29 }
 0x2d4   : > { %p1122_p2 = pneg %p1121_p11 }
 0x2d5   : > { %p1128_p5 = por %p1127_p0, %p1126_p13 }
 0x2d7   : > { %p1129_p10 = pnand %p1128_p5, %p1122_p2 }
 0x380   : > { %v678_v43 = vpop.f32.mrf.mxu1 }
 0x381   : > { %683 = vst.msk [vmem:[%s312_s30] sm:$0x1] %vm682_vm4, %v678_v43 }
 0x382   : > { %v914_v44 = vpop.f32.mrf.mxu1 }
 0x383   : > { %1132 = shalt.err (!%p1129_p10)
}
 0x384   : > { %s1133_s11 = scalar_lea.hbm %s1434_s3, 16  ;;  %s1137_s9 = scalar_lea.hbm %s1487_s5, 32 }
 0x385   : > { %p1134_p1 = scmp.ne.s32.totalorder %s1434_s3, %s1133_s11  ;;  %p1138_p12 = scmp.lt.s32.totalorder %s1434_s3, %s1487_s5 }
 0x386   : > { %p1139_p3 = scmp.lt.s32.totalorder %s1137_s9, %s1133_s11 }
 0x387   : > { %p1135_p4 = pnand %p1134_p1, %p1348_p7 }
 0x388   : > { %p1140_p8 = por %p1139_p3, %p1138_p12 }
 0x389   : > { %p1136_p6 = pneg %p1135_p4 }
 0x38b   : > { %p1141_p9 = pnand %p1140_p8, %p1136_p6 }
 0x38d   : > { %1144 = shalt.err (!%p1141_p9)
}
 0x38e   : > { %925 = dma.vmem_to_hbm [thread:$0]  (%p1348_p7), %s1436_s16, 16, %s1434_s3, %s685_s1  }
 0x38f PF: > { %s728_s28 = sand.u32 1, %s1187_s21   ;;  %p1506_p11 = scmp.ne.s32.totalorder %s1497_s8, 0 }
 0x390   : > { %p1507_p2 = scmp.ge.s32.totalorder %s1207_s26, 2  ;;  %s729_s30 = scalar_lea.sflag [#allocation6], %s728_s28 }
 0x392   : > { %p941_p13 = pnand %p1507_p2, %p1506_p11 }
 0x394   : > { %p942_p0 = pneg %p941_p13 }
 0x396   : > { %1178 = dma.done.wait (%p942_p0), %s729_s30, 16  }
 0x397   : > { %1180 = vsyncadd (%p942_p0), %s729_s30, 4294967280  ;;  %s737_s14 = scalar_lea.sflag [#allocation12], %s728_s28 }
 0x398   : > { %1182 = dma.done.wait (%p942_p0), %s737_s14, 128  }
 0x399   : > { %1184 = vsyncadd (%p942_p0), %s737_s14, 4294967168  ;;  %s27_s26 = sadd.s32 1, %s1207_s26   ;;  %s1508_s21 = smov %s1191_s22 }
 0x39a   : > { %p24_p5 = scmp.ge.s32.totalorder %s27_s26, 4   ;;  %s1509_s22 = smov %s1195_s23 }
 0x39b   : > { %s1510_s23 = smov %s1357_s17  ;;  %s1511_s24 = smov %s1203_s25 }
 0x39c   : > { %s1512_s25 = smov %s1514_s10  ;;  %26 = sbr.rel (!%p24_p5) target bundleno = 12 (0xc), region = 119 }
 0x3a1   :  { %742 = vsyncpa [#allocation5], 1 }
 0x3a2   :  { %744 = vsyncpa [#allocation5 + $0x1], 1 }
 0x3a3   :  { %745 = vsyncpa [#allocation8], 1 }
 0x3a4   :  { %746 = vsyncpa [#allocation6], 1 }
 0x3a5   :  { %748 = vsyncpa [#allocation6 + $0x1], 1 }
 0x3a6   :  { %749 = vsyncpa [#allocation12], 1 }
 0x3a7   :  { %751 = vsyncpa [#allocation12 + $0x1], 1 }

</bundles_post_ra>
